<compile_context>
chip_gen: v7x
topology: tpu7x:2x2x1
jax: 0.10.0
libtpu: 0.0.40
codegen_flags: <defaults>
</compile_context>

<pallas_src>
import math
import functools

import numpy as np
import jax
import jax.numpy as jnp
from jax.experimental import pallas as pl
from jax.experimental.pallas import tpu as pltpu


def mha_kernel(x_ref, w_ref, b_ref, mask_ref, o_ref, *, B, S, E, H):
    """Whole problem in one grid step.

    x_ref:    (B*S, E)    flattened input sentences
    w_ref:    (E, 3E)     qkv weight, transposed + column-permuted to [Q|K|V]
    b_ref:    (1, 3E)     qkv bias, same permutation
    mask_ref: (H*S, E)    head-block-diagonal mask (1.0 where row-head == col-head)
    o_ref:    (B, S, E)   out[b, i, h*dh + d] = attention output of head h
    """
    dh = E // 3  # chunk(3, dim=-1) head width

    x = x_ref[...]
    w = w_ref[...]
    b = b_ref[...]
    mask = mask_ref[...][None]                                       # (1, H*S, E)

    # --- QKV projection: one tall MXU matmul, bias folded in once ------------
    qkv = jnp.dot(x, w, preferred_element_type=jnp.float32) + b      # (B*S, 3E)
    qkv = qkv.reshape(B, S, 3 * E)

    Q = qkv[:, :, 0:E]                                               # (B, S, E)
    K = qkv[:, :, E:2 * E]                                           # col h*dh+d = head h, dim d
    V = qkv[:, :, 2 * E:3 * E]

    # --- head-block-diagonal K/V: batches the 3 per-head matmuls into one ----
    # K_blk[b, h*S + j, c] = K[b, j, c] if c // dh == h else 0
    K_blk = jnp.concatenate([K] * H, axis=1) * mask                  # (B, H*S, E)
    V_blk = jnp.concatenate([V] * H, axis=1) * mask                  # (B, H*S, E)

    # scores[b, i, h*S + j] = (q_h[b,i] . k_h[b,j]) / sqrt(E)  — one batched matmul,
    # contraction expressed directly (no .T materialization).
    inv_sqrt = 1.0 / math.sqrt(E)
    scores = jnp.einsum("bic,bnc->bin", Q, K_blk,
                        preferred_element_type=jnp.float32) * inv_sqrt   # (B, S, H*S)

    # --- softmax across the HEAD axis (torch implicit dim=1 on the 4-D tensor) -
    # heads live in S-wide lane spans of the concatenated score layout.
    m = scores[:, :, 0:S]
    for h in range(1, H):
        m = jnp.maximum(m, scores[:, :, h * S:(h + 1) * S])          # (B, S, S)
    p = jnp.exp(scores - jnp.concatenate([m] * H, axis=2))           # (B, S, H*S)
    denom = p[:, :, 0:S]
    for h in range(1, H):
        denom = denom + p[:, :, h * S:(h + 1) * S]                   # (B, S, S)
    # exact reciprocal keeps 1e-5 parity with the f32 reference; flip to
    # approx=True to push the divide onto the EUP slot if tolerance allows.
    inv_denom = pl.reciprocal(denom, approx=False)
    attn = p * jnp.concatenate([inv_denom] * H, axis=2)              # (B, S, H*S)

    # out[b, i, h*dh + d] = sum_j attn_h[b,i,j] * v_h[b,j,d] — one batched matmul,
    # result is already the lane-dense (B, S, E) output slab.
    out = jnp.einsum("bin,bnc->bic", attn, V_blk,
                     preferred_element_type=jnp.float32)             # (B, S, E)
    o_ref[...] = out.astype(o_ref.dtype)


def multi_head_attention(sentences, w_qkv, b_qkv, num_heads):
    B, S, E = sentences.shape
    assert num_heads == 3, "reference reshape requires num_heads == 3"
    assert E % 3 == 0, "chunk(3) exactness requires embedding_size % 3 == 0"
    H = num_heads
    dh = E // 3

    # ---- wrapper-side layout plumbing (outside the kernel, runs once) -------
    # torch Linear: y = x @ W.T + b.  Permute output columns so the projection
    # lands as [Q_allheads | K_allheads | V_allheads] (heads contiguous inside
    # each E-wide span) instead of torch's [q0 k0 v0 | q1 k1 v1 | ...] interleave.
    which = np.arange(3)[:, None, None]          # 0=q, 1=k, 2=v
    head = np.arange(H)[None, :, None]
    d = np.arange(dh)[None, None, :]
    perm = (head * E + which * dh + d).reshape(3 * E)   # new column -> torch column

    w_p = jnp.transpose(w_qkv)[:, perm]          # (E, 3E)
    b_p = b_qkv[perm].reshape(1, 3 * E)          # (1, 3E)

    # head-block-diagonal mask shared by the K/V arrangements
    mask = jnp.asarray(
        (np.arange(H * S)[:, None] // S) == (np.arange(E)[None, :] // dh),
        dtype=sentences.dtype)                   # (H*S, E)

    x2d = sentences.reshape(B * S, E)            # free reshape: batch folded into M

    kernel = functools.partial(mha_kernel, B=B, S=S, E=E, H=H)

    out_cat = pl.pallas_call(
        kernel,
        out_shape=jax.ShapeDtypeStruct((B, S, E), sentences.dtype),
        grid=(1,),
        in_specs=[
            pl.BlockSpec((B * S, E), lambda i: (0, 0)),
            pl.BlockSpec((E, 3 * E), lambda i: (0, 0)),
            pl.BlockSpec((1, 3 * E), lambda i: (0, 0)),
            pl.BlockSpec((H * S, E), lambda i: (0, 0)),
        ],
        out_specs=pl.BlockSpec((B, S, E), lambda i: (0, 0, 0)),
        compiler_params=pltpu.CompilerParams(
            dimension_semantics=("arbitrary",)),
    )(x2d, w_p, b_p, mask)

    # free layout plumbing back to the reference (B, H, S, dh) output
    return out_cat.reshape(B, S, H, dh).transpose(0, 2, 1, 3)


def reference_jax(sentences, w_qkv, b_qkv, num_heads):
    """Pure-JAX mirror of the PyTorch forward (mask=None path)."""
    B, S, E = sentences.shape
    x = jnp.einsum("bse,fe->bsf", sentences, w_qkv) + b_qkv          # (B,S,3E)
    x = x.reshape(B, S, num_heads, E).transpose(0, 2, 1, 3)          # (B,H,S,E)
    q, k, v = jnp.split(x, 3, axis=-1)                               # (B,H,S,E/3)
    attn = jnp.einsum("bhqd,bhkd->bhqk", q, k) / math.sqrt(E)        # (B,H,S,S)
    attn = jax.nn.softmax(attn, axis=1)                              # torch implicit dim=1
    out = jnp.einsum("bhqk,bhkd->bhqd", attn, v)                     # (B,H,S,E/3)
    return out[0:B]                                                  # == attention[0:batch]


if __name__ == "__main__":
    # small shapes consistent with the module: batch=2, seq=8, embed=24, heads=3
    B, S, E, H = 2, 8, 24, 3

    key = jax.random.PRNGKey(0)
    k1, k2, k3 = jax.random.split(key, 3)

    sentences = jax.random.normal(k1, (B, S, E), dtype=jnp.float32)

    # deterministic nn.Linear-style init: U(-1/sqrt(fan_in), 1/sqrt(fan_in))
    bound = 1.0 / math.sqrt(E)
    w_qkv = jax.random.uniform(k2, (3 * E, E), minval=-bound, maxval=bound,
                               dtype=jnp.float32)
    b_qkv = jax.random.uniform(k3, (3 * E,), minval=-bound, maxval=bound,
                               dtype=jnp.float32)

    out = multi_head_attention(sentences, w_qkv, b_qkv, H)
    out = jax.block_until_ready(out)

    ref = reference_jax(sentences, w_qkv, b_qkv, H)
    assert out.shape == (B, H, S, E // 3), out.shape
    assert jnp.allclose(out, ref, rtol=1e-5, atol=1e-5), "kernel/reference mismatch"

    print("KERNEL_OK")
</pallas_src>

<mosaic_0001>
module attributes {stable_mosaic.version = 11 : i64} {
  func.func @mha_kernel(%arg0: i32, %arg1: memref<16x24xf32, #tpu.memory_space<vmem>>, %arg2: memref<24x72xf32, #tpu.memory_space<vmem>>, %arg3: memref<1x72xf32, #tpu.memory_space<vmem>>, %arg4: memref<24x24xf32, #tpu.memory_space<vmem>>, %arg5: memref<2x8x24xf32, #tpu.memory_space<vmem>>) attributes {dimension_semantics = [#tpu.dimension_semantics<arbitrary>], iteration_bounds = array<i64: 1>, scalar_prefetch = 0 : i64, scratch_operands = 0 : i64, tpu.core_type = #tpu.core_type<tc>, window_params = [{pipeline_mode = #tpu.pipeline_mode<synchronous>, transform_indices = @transform_0, window_bounds = array<i64: 16, 24>}, {pipeline_mode = #tpu.pipeline_mode<synchronous>, transform_indices = @transform_1, window_bounds = array<i64: 24, 72>}, {pipeline_mode = #tpu.pipeline_mode<synchronous>, transform_indices = @transform_2, window_bounds = array<i64: 1, 72>}, {pipeline_mode = #tpu.pipeline_mode<synchronous>, transform_indices = @transform_3, window_bounds = array<i64: 24, 24>}, {pipeline_mode = #tpu.pipeline_mode<synchronous>, transform_indices = @transform_4, window_bounds = array<i64: 2, 8, 24>}]} {
    %c0 = arith.constant 0 : index
    %c0_0 = arith.constant 0 : index
    %0 = vector.load %arg1[%c0, %c0_0] : memref<16x24xf32, #tpu.memory_space<vmem>>, vector<16x24xf32>
    %c0_1 = arith.constant 0 : index
    %c0_2 = arith.constant 0 : index
    %1 = vector.load %arg2[%c0_1, %c0_2] : memref<24x72xf32, #tpu.memory_space<vmem>>, vector<24x72xf32>
    %c0_3 = arith.constant 0 : index
    %c0_4 = arith.constant 0 : index
    %2 = vector.load %arg3[%c0_3, %c0_4] : memref<1x72xf32, #tpu.memory_space<vmem>>, vector<1x72xf32>
    %c0_5 = arith.constant 0 : index
    %c0_6 = arith.constant 0 : index
    %3 = vector.load %arg4[%c0_5, %c0_6] : memref<24x24xf32, #tpu.memory_space<vmem>>, vector<24x24xf32>
    %4 = vector.shape_cast %3 : vector<24x24xf32> to vector<1x24x24xf32>
    %cst = arith.constant dense<0.000000e+00> : vector<16x72xf32>
    %5 = tpu.matmul %0, %1, %cst {dimension_numbers = #tpu.dot_dimension_numbers<[1], [0], [0], [1], [0, 0, 1, 1], [], []>} : vector<16x24xf32>, vector<24x72xf32>, vector<16x72xf32> -> vector<16x72xf32>
    %6 = vector.broadcast %2 : vector<1x72xf32> to vector<16x72xf32>
    %7 = arith.addf %5, %6 : vector<16x72xf32>
    %8 = vector.shape_cast %7 : vector<16x72xf32> to vector<2x8x72xf32>
    %9 = vector.extract_strided_slice %8 {offsets = [0, 0, 0], sizes = [2, 8, 24], strides = [1, 1, 1]} : vector<2x8x72xf32> to vector<2x8x24xf32>
    %10 = vector.extract_strided_slice %8 {offsets = [0, 0, 24], sizes = [2, 8, 24], strides = [1, 1, 1]} : vector<2x8x72xf32> to vector<2x8x24xf32>
    %11 = vector.extract_strided_slice %8 {offsets = [0, 0, 48], sizes = [2, 8, 24], strides = [1, 1, 1]} : vector<2x8x72xf32> to vector<2x8x24xf32>
    %12 = tpu.concatenate %10, %10, %10 in 1 : vector<2x8x24xf32>, vector<2x8x24xf32>, vector<2x8x24xf32> -> vector<2x24x24xf32>
    %13 = vector.broadcast %4 : vector<1x24x24xf32> to vector<2x24x24xf32>
    %14 = arith.mulf %12, %13 : vector<2x24x24xf32>
    %15 = tpu.concatenate %11, %11, %11 in 1 : vector<2x8x24xf32>, vector<2x8x24xf32>, vector<2x8x24xf32> -> vector<2x24x24xf32>
    %16 = vector.broadcast %4 : vector<1x24x24xf32> to vector<2x24x24xf32>
    %17 = arith.mulf %15, %16 : vector<2x24x24xf32>
    "tpu.trace_start"() <{level = 10 : i32, message = "bic,bnc->bin"}> : () -> ()
    %cst_7 = arith.constant dense<0.000000e+00> : vector<2x8x24xf32>
    %18 = tpu.matmul %9, %14, %cst_7 {dimension_numbers = #tpu.dot_dimension_numbers<[2], [2], [1], [1], [0, 0, 0, 1, 1, 1], [0], [0]>} : vector<2x8x24xf32>, vector<2x24x24xf32>, vector<2x8x24xf32> -> vector<2x8x24xf32>
    "tpu.trace_stop"() : () -> ()
    %cst_8 = arith.constant 0.204124153 : f32
    %19 = vector.broadcast %cst_8 : f32 to vector<2x8x24xf32>
    %20 = arith.mulf %18, %19 : vector<2x8x24xf32>
    %21 = vector.extract_strided_slice %20 {offsets = [0, 0, 0], sizes = [2, 8, 8], strides = [1, 1, 1]} : vector<2x8x24xf32> to vector<2x8x8xf32>
    %22 = vector.extract_strided_slice %20 {offsets = [0, 0, 8], sizes = [2, 8, 8], strides = [1, 1, 1]} : vector<2x8x24xf32> to vector<2x8x8xf32>
    %23 = arith.maximumf %21, %22 : vector<2x8x8xf32>
    %24 = vector.extract_strided_slice %20 {offsets = [0, 0, 16], sizes = [2, 8, 8], strides = [1, 1, 1]} : vector<2x8x24xf32> to vector<2x8x8xf32>
    %25 = arith.maximumf %23, %24 : vector<2x8x8xf32>
    %26 = tpu.concatenate %25, %25, %25 in 2 : vector<2x8x8xf32>, vector<2x8x8xf32>, vector<2x8x8xf32> -> vector<2x8x24xf32>
    %27 = arith.subf %20, %26 : vector<2x8x24xf32>
    %28 = math.exp %27 : vector<2x8x24xf32>
    %29 = vector.extract_strided_slice %28 {offsets = [0, 0, 0], sizes = [2, 8, 8], strides = [1, 1, 1]} : vector<2x8x24xf32> to vector<2x8x8xf32>
    %30 = vector.extract_strided_slice %28 {offsets = [0, 0, 8], sizes = [2, 8, 8], strides = [1, 1, 1]} : vector<2x8x24xf32> to vector<2x8x8xf32>
    %31 = arith.addf %29, %30 : vector<2x8x8xf32>
    %32 = vector.extract_strided_slice %28 {offsets = [0, 0, 16], sizes = [2, 8, 8], strides = [1, 1, 1]} : vector<2x8x24xf32> to vector<2x8x8xf32>
    %33 = arith.addf %31, %32 : vector<2x8x8xf32>
    %34 = tpu.reciprocal %33 : vector<2x8x8xf32> -> vector<2x8x8xf32>
    %35 = tpu.concatenate %34, %34, %34 in 2 : vector<2x8x8xf32>, vector<2x8x8xf32>, vector<2x8x8xf32> -> vector<2x8x24xf32>
    %36 = arith.mulf %28, %35 : vector<2x8x24xf32>
    "tpu.trace_start"() <{level = 10 : i32, message = "bin,bnc->bic"}> : () -> ()
    %cst_9 = arith.constant dense<0.000000e+00> : vector<2x8x24xf32>
    %37 = tpu.matmul %36, %17, %cst_9 {dimension_numbers = #tpu.dot_dimension_numbers<[2], [1], [1], [2], [0, 0, 0, 1, 1, 2], [0], [0]>} : vector<2x8x24xf32>, vector<2x24x24xf32>, vector<2x8x24xf32> -> vector<2x8x24xf32>
    "tpu.trace_stop"() : () -> ()
    %c0_10 = arith.constant 0 : index
    %c0_11 = arith.constant 0 : index
    %c0_12 = arith.constant 0 : index
    %38 = vector.load %arg5[%c0_10, %c0_11, %c0_12] : memref<2x8x24xf32, #tpu.memory_space<vmem>>, vector<2x8x24xf32>
    tpu.vector_store %arg5[%c0_10, %c0_11, %c0_12], %37 {strides = array<i32>} : memref<2x8x24xf32, #tpu.memory_space<vmem>>, vector<2x8x24xf32>,
    return
  }
  func.func @transform_0(%arg0: i32) -> (i32, i32) {
    %c0_i32 = arith.constant 0 : i32
    %c0_i32_0 = arith.constant 0 : i32
    %c0_i32_1 = arith.constant 0 : i32
    return %c0_i32, %c0_i32_0 : i32, i32
  }
  func.func @transform_1(%arg0: i32) -> (i32, i32) {
    %c0_i32 = arith.constant 0 : i32
    %c0_i32_0 = arith.constant 0 : i32
    %c0_i32_1 = arith.constant 0 : i32
    return %c0_i32, %c0_i32_0 : i32, i32
  }
  func.func @transform_2(%arg0: i32) -> (i32, i32) {
    %c0_i32 = arith.constant 0 : i32
    %c0_i32_0 = arith.constant 0 : i32
    %c0_i32_1 = arith.constant 0 : i32
    return %c0_i32, %c0_i32_0 : i32, i32
  }
  func.func @transform_3(%arg0: i32) -> (i32, i32) {
    %c0_i32 = arith.constant 0 : i32
    %c0_i32_0 = arith.constant 0 : i32
    %c0_i32_1 = arith.constant 0 : i32
    return %c0_i32, %c0_i32_0 : i32, i32
  }
  func.func @transform_4(%arg0: i32) -> (i32, i32, i32) {
    %c0_i32 = arith.constant 0 : i32
    %c0_i32_0 = arith.constant 0 : i32
    %c0_i32_1 = arith.constant 0 : i32
    %c0_i32_2 = arith.constant 0 : i32
    return %c0_i32, %c0_i32_0, %c0_i32_1 : i32, i32, i32
  }
}

</mosaic_0001>

<bundles_post_ra>
// kernel: tpu_custom_call.1
= control target key start
LH: loop header
LB: loop body
LE: loop exit
PB: predicated region body
PF: predicated region fallthrough
CT: control target
= control target key end

     0   :  { %9 = vsyncpa [#allocation3], 0  ;;  %s1077_s0 = inlined_call_operand.hbm [shape: f32[16,24], index: 0, kind: input, shape index: {}]   ;;  %s1078_s1 = inlined_call_operand.hbm [shape: f32[24,72], index: 1, kind: input, shape index: {}]   ;;  %s1079_s2 = inlined_call_operand.vmem [shape: f32[1,72], index: 2, kind: input, shape index: {}]   ;;  %s1080_s3 = inlined_call_operand.hbm [shape: f32[24,24], index: 3, kind: input, shape index: {}]   ;;  %s1081_s4 = inlined_call_operand.hbm [shape: f32[2,8,24], index: 4, kind: output, shape index: {}]  }
   0x1   :  { %10 = vsyncpa [#allocation6], 0 }
   0x2   :  { %11 = vsyncpa [#allocation4], 0  ;;  %s876_s15 = smov [#allocation5]   ;;  %s877_s17 = smov [#allocation2]  }
   0x3   :  { %s29_s16 = sshll.u32 %s876_s15, 4  ;;  %s17_s18 = sshll.u32 %s877_s17, 4  ;;  %s30_s16 = int_to_ptr.vmem [resolvable:$true] %s29_s16  ;;  %s917_s18 = int_to_ptr.vmem [resolvable:$true] %s17_s18 }
   0x4   :  { %s782_s21 = scalar_lea.hbm %s1078_s1, 384 }
   0x5   :  { %p783_p0 = scmp.ne.s32.totalorder %s1078_s1, %s782_s21  ;;  %p786_p1 = scmp.lt.u32.totalorder %s782_s21, %s1078_s1 }
   0x7   :  { %p788_p2 = pnand %p786_p1, %p783_p0 }
   0x9   :  { %791 = shalt.err (!%p788_p2)
}
   0xa   :  { %s792_s26 = scalar_lea.vmem %s30_s16, 384  ;;  %p797_p4 = scmp.lt.s32.totalorder %s30_s16, %s30_s16 }
   0xb   :  { %p793_p3 = scmp.ne.s32.totalorder %s30_s16, %s792_s26  ;;  %p798_p5 = scmp.lt.s32.totalorder %s792_s26, %s792_s26 }
   0xd   :  { %p799_p6 = por %p798_p5, %p797_p4 }
   0xf   :  { %p800_p7 = pnand %p799_p6, %p793_p3 }
  0x11   :  { %803 = shalt.err (!%p800_p7)
}
  0x12   :  { %s878_s27 = smov 128   ;;  %s879_s28 = smov 8  }
  0x13   :  { %35 = dma.hbm_to_vmem [thread:$0]  %s1078_s1, 384, %s30_s16, [#allocation6], %s878_s27, %s878_s27, %s879_s28  }
  0x14   :  { %s804_s7 = scalar_lea.hbm %s1077_s0, 256 }
  0x15   :  { %p805_p8 = scmp.ne.s32.totalorder %s1077_s0, %s804_s7  ;;  %p808_p9 = scmp.lt.u32.totalorder %s804_s7, %s1077_s0 }
  0x17   :  { %p810_p10 = pnand %p808_p9, %p805_p8 }
  0x19   :  { %813 = shalt.err (!%p810_p10)
}
  0x1a   :  { %s814_s12 = scalar_lea.vmem %s917_s18, 256  ;;  %p819_p12 = scmp.lt.s32.totalorder %s917_s18, %s917_s18 }
  0x1b   :  { %p815_p11 = scmp.ne.s32.totalorder %s917_s18, %s814_s12  ;;  %p820_p13 = scmp.lt.s32.totalorder %s814_s12, %s814_s12 }
  0x1d   :  { %p821_p0 = por %p820_p13, %p819_p12 }
  0x1f   :  { %p822_p1 = pnand %p821_p0, %p815_p11 }
  0x21   :  { %825 = shalt.err (!%p822_p1)
}
  0x22   :  { %23 = dma.hbm_to_vmem [thread:$0]  %s1077_s0, 256, %s917_s18, [#allocation3], %s878_s27, %s878_s27, %s879_s28  }
  0x23   :  { %s880_s14 = smov [#allocation7]   ;;  %s826_s19 = scalar_lea.hbm %s1080_s3, 384 }
  0x24   :  { %s43_s15 = sshll.u32 %s880_s14, 4  ;;  %p827_p2 = scmp.ne.s32.totalorder %s1080_s3, %s826_s19  ;;  %s44_s15 = int_to_ptr.vmem [resolvable:$true] %s43_s15 }
  0x25   :  { %p830_p3 = scmp.lt.u32.totalorder %s826_s19, %s1080_s3 }
  0x27   :  { %p832_p4 = pnand %p830_p3, %p827_p2 }
  0x29   :  { %835 = shalt.err (!%p832_p4)
}
  0x2a   :  { %s836_s24 = scalar_lea.vmem %s44_s15, 384  ;;  %p841_p6 = scmp.lt.s32.totalorder %s44_s15, %s44_s15 }
  0x2b   :  { %p837_p5 = scmp.ne.s32.totalorder %s44_s15, %s836_s24  ;;  %p842_p7 = scmp.lt.s32.totalorder %s836_s24, %s836_s24 }
  0x2d   :  { %p843_p8 = por %p842_p7, %p841_p6 }
  0x2f   :  { %p844_p9 = pnand %p843_p8, %p837_p5 }
  0x31   :  { %847 = shalt.err (!%p844_p9)
}
  0x32   :  { %49 = dma.hbm_to_vmem [thread:$0]  %s1080_s3, 384, %s44_s15, [#allocation6], %s878_s27, %s878_s27, %s879_s28  }
  0x33   :  { %870 = dma.done.wait [#allocation3], 256  }
  0x34   :  { %871 = vsyncadd [#allocation3], 4294967040 }
  0x35   :  { %872 = dma.done.wait [#allocation6], 768  }
  0x36   :  { %873 = vsyncadd [#allocation6], 4294966528  ;;  %vm74_vm0 = vcmask 195584   ;;  %v61_v0 = vld [vmem:[#allocation5] sm:$0xff]  ;;  %v62_v1 = vld [vmem:[#allocation5 + $0x8] sm:$0xff]  ;;  %s881_s25 = smov 24  }
  0x37   :  { %v720_v2 = vpack.c.bf16 %v62_v1, %v61_v0  ;;  %v59_v3 = vld [vmem:[#allocation2] sm:$0xff]  ;;  %v969_v4 = vld [vmem:[#allocation7] sm:$0xff]  ;;  %v973_v6 = vld [vmem:[#allocation7 + $0x10] sm:$0xff]  ;;  %v882_v10 = vmov 0.0|0.0   ;;  %s883_s29 = smov 104   ;;  %vm884_vm1 = vmmov 0  }
  0x38   :  { %v63_v5 = vld [vmem:[#allocation5 + $0x10] sm:$0xff]  ;;  %681 = vmatprep.mubr.msk.f32.mxu0 %vm74_vm0, %v59_v3  ;;  %159 = vrot.lane.b32.xlu0 %v969_v4, %s881_s25  ;;  %v976_v7 = vld [vmem:[#allocation7 + $0x8] sm:$0xff]  ;;  %v60_v8 = vld [vmem:[#allocation2 + $0x8] sm:$0xff]  ;;  %v885_v24 = vmov 0.0   ;;  %s887_s30 = smov 112   ;;  %s888_s5 = smov 16  }
  0x39   :  { %721 = vmatprep.subr.bf16.mxu0 %v720_v2  ;;  %163 = vrot.lane.b32.xlu1 %v973_v6, %s881_s25  ;;  %v641_v11 = vld [vmem:[%s1079_s2] ss:$0 sm:$0xff]  ;;  %vm726_vm2 = vmpackc.low %vm74_vm0, %vm74_vm0  ;;  %s886_s2 = smov 120   ;;  %vm399_vm3 = vcmask 64512   ;;  %vm402_vm4 = vcmask 130048   ;;  %s889_s6 = smov 48  }
  0x3a   :  { %723 = vmatpush3.bf16.msra.mxu0 %v720_v2  ;;  %724 = vmatprep.subr.bf16.mxu1 %v882_v10  ;;  %s890_s7 = smov 80   ;;  %s891_s8 = smov [#allocation8]  }
  0x3b   :  { %679 = vmatprep.subr.mxu0 %v63_v5  ;;  %690 = vmatprep.mubr.msk.f32.mxu1 %vm884_vm1, %v885_v24  ;;  %s628_s9 = sshll.u32 %s891_s8, 4  ;;  %s629_s9 = int_to_ptr.vmem [resolvable:$true] %s628_s9 }
  0x3c   :  { %161 = vrot.lane.b32.xlu0 %v976_v7, %s881_s25  ;;  %s848_s10 = scalar_lea.vmem %s629_s9, 256  ;;  %p853_p11 = scmp.lt.s32.totalorder %s629_s9, %s629_s9 }
  0x3d   :  { %p849_p10 = scmp.ne.s32.totalorder %s629_s9, %s848_s10  ;;  %p854_p12 = scmp.lt.s32.totalorder %s848_s10, %s848_s10 }
  0x3e   :  { %680 = vmatpush3.msra.mxu0 %v63_v5 }
  0x3f   :  { %682 = vmatmul.mubr.msk.f32.vlgmr.msra.gmra.mrb[0].mxu0 %vm74_vm0, %v60_v8  ;;  %728 = vmatprep.subr.bf16.mxu0 %v882_v10  ;;  %p855_p13 = por %p854_p12, %p853_p11 }
  0x40   :  { %699 = vmatprep.mubr.msk.f32.mxu0 %vm884_vm1, %v885_v24 }
  0x41   :  { %p856_p0 = pnand %p855_p13, %p849_p10 }
  0xaa   :  { %v160_v9 = vpop.permute.xlu0 %159 }
  0xab   :  { %v164_v22 = vpop.permute.xlu1 %163 }
  0xae   :  { %v162_v13 = vpop.permute.xlu0 %161 }
 0x112   :  { %v683_v12 = vpop.f32.mrb[0].mxu0 }
 0x113   :  { %v983_v14 = vadd.f32 %v683_v12, %v641_v11  ;;  %v147_v15 = vpop.f32.mrb[1].mxu0 }
 0x114   :  { %v985_v16 = vadd.f32 %v641_v11, %v147_v15 }
 0x115   :  { %v171_v17 = vmul.f32 %v160_v9, %v983_v14  ;;  %v172_v18 = vmul.f32 %v162_v13, %v983_v14  ;;  %v173_v25 = vmul.f32 %v164_v22, %v983_v14 }
 0x116   :  { %v168_v19 = vmul.f32 %v160_v9, %v985_v16  ;;  %v169_v20 = vmul.f32 %v162_v13, %v985_v16  ;;  %v170_v26 = vmul.f32 %v164_v22, %v985_v16 }
 0x117   :  { %v759_v21 = vpack.i.bf16 %v172_v18, %v171_v17 }
 0x118   :  { %v754_v23 = vpack.i.bf16 %v169_v20, %v168_v19 }
 0x119   :  { %760 = vrot.lane.b32.xlu0 %v759_v21, %s883_s29 }
 0x11a   :  { %755 = vrot.lane.b32.xlu1 %v754_v23, %s883_s29 }
 0x11d   :  { %284 = vrot.lane.b32.xlu0 %v173_v25, %s883_s29 }
 0x11e   :  { %196 = vrot.lane.b32.xlu1 %v170_v26, %s883_s29 }
 0x18b   :  { %v761_v27 = vpop.permute.xlu0 %760 }
 0x18c   :  { %v763_v28 = vunpack.i.h.bf16 %v761_v27  ;;  %v762_v29 = vunpack.i.l.bf16 %v761_v27  ;;  %v756_v30 = vpop.permute.xlu1 %755 }
 0x18d   :  { %v758_v31 = vunpack.i.h.bf16 %v756_v30  ;;  %v757_v32 = vunpack.i.l.bf16 %v756_v30 }
 0x18e   :  { %v729_v33 = vpack.c.bf16 %v763_v28, %v762_v29 }
 0x18f   :  { %v725_v34 = vpack.c.bf16 %v758_v31, %v757_v32  ;;  %v285_v35 = vpop.permute.xlu0 %284 }
 0x190   :  { %731 = vmatpush3.bf16.xpose.msk.msra.mxu0 %vm726_vm2, %v729_v33  ;;  %v197_v36 = vpop.permute.xlu1 %196 }
 0x191   :  { %727 = vmatpush3.bf16.xpose.msk.msra.mxu1 %vm726_vm2, %v725_v34  ;;  %697 = vmatprep.subr.mxu0 %v885_v24 }
 0x192   :  { %688 = vmatprep.subr.mxu1 %v885_v24 }
 0x198   :  { %698 = vmatpush3.xpose.msk.msra.mxu0 %vm74_vm0, %v285_v35 }
 0x199   :  { %689 = vmatpush3.xpose.msk.msra.mxu1 %vm74_vm0, %v197_v36  ;;  %735 = vmatprep.subr.bf16.mxu0 %v882_v10 }
 0x19a   :  { %732 = vmatprep.subr.bf16.mxu1 %v882_v10 }
 0x19b   :  { %700 = vmatmul.mubr.msk.f32.vlgmr.msra.gmra.mrb[2].mxu0 %vm74_vm0, %v983_v14 }
 0x19c   :  { %691 = vmatmul.mubr.msk.f32.vlgmr.msra.gmra.mrb[0].mxu1 %vm74_vm0, %v985_v16  ;;  %717 = vmatprep.mubr.msk.f32.mxu0 %vm884_vm1, %v885_v24 }
 0x19d   :  { %708 = vmatprep.mubr.msk.f32.mxu1 %vm884_vm1, %v885_v24 }
 0x26e   :  { %v361_v37 = vpop.f32.mrb[2].mxu0 }
 0x26f   :  { %v366_v38 = vmul.f32 0.20412415, %v361_v37  ;;  %v273_v39 = vpop.f32.mrb[0].mxu1  ;;  %v701_v40 = vpop.f32.mrb[3].mxu0 }
 0x270   :  { %v365_v41 = vmul.f32 0.20412415, %v273_v39  ;;  %v692_v42 = vpop.f32.mrb[1].mxu1 }
 0x271   :  { %371 = vrot.lane.b32.xlu0 %v366_v38, %s886_s2 }
 0x272   :  { %369 = vrot.lane.b32.xlu1 %v365_v41, %s886_s2 }
 0x275   :  { %379 = vrot.lane.b32.xlu0 %v366_v38, %s887_s30 }
 0x276   :  { %377 = vrot.lane.b32.xlu1 %v365_v41, %s887_s30 }
 0x2e3   :  { %v372_v43 = vpop.permute.xlu0 %371 }
 0x2e4   :  { %v370_v44 = vpop.permute.xlu1 %369  ;;  %v376_v45 = vmax.f32 %v366_v38, %v372_v43 }
 0x2e5   :  { %v375_v46 = vmax.f32 %v365_v41, %v370_v44 }
 0x2e7   :  { %v380_v47 = vpop.permute.xlu0 %379 }
 0x2e8   :  { %v384_v48 = vmax.f32 %v376_v45, %v380_v47  ;;  %v378_v49 = vpop.permute.xlu1 %377 }
 0x2e9   :  { %v383_v50 = vmax.f32 %v375_v46, %v378_v49 }
 0x2ea   :  { %389 = vrot.lane.b32.xlu0 %v384_v48, %s879_s28 }
 0x2eb   :  { %387 = vrot.lane.b32.xlu1 %v383_v50, %s879_s28 }
 0x2ee   :  { %395 = vrot.lane.b32.xlu0 %v384_v48, %s888_s5 }
 0x2ef   :  { %393 = vrot.lane.b32.xlu1 %v383_v50, %s888_s5 }
 0x35c   :  { %v390_v51 = vpop.permute.xlu0 %389 }
 0x35d   :  { %v388_v52 = vpop.permute.xlu1 %387  ;;  %v401_v53 = vsel %vm399_vm3, %v384_v48, %v390_v51 }
 0x35e   :  { %v400_v55 = vsel %vm399_vm3, %v383_v50, %v388_v52 }
 0x360   :  { %v396_v54 = vpop.permute.xlu0 %395 }
 0x361   :  { %v404_v56 = vsel %vm402_vm4, %v401_v53, %v396_v54  ;;  %v394_v57 = vpop.permute.xlu1 %393 }
 0x362   :  { %v406_v58 = vsub.f32 %v366_v38, %v404_v56  ;;  %v403_v59 = vsel %vm402_vm4, %v400_v55, %v394_v57 }
 0x363   :  { %v405_v60 = vsub.f32 %v365_v41, %v403_v59 }
 0x364   :  { %v409_v61 = vmul.f32 1.442695, %v406_v58 }
 0x365   :  { %v407_v62 = vmul.f32 1.442695, %v405_v60 }
 0x366   :  { %774 = vpow2.f32 %v409_v61 }
 0x367   :  { %776 = vpow2.f32 %v407_v62 }
 0x370   :  { %v1023_v63 = vpop.eup %774 }
 0x371   :  { %v1025_v0 = vpop.eup %776  ;;  %415 = vrot.lane.b32.xlu0 %v1023_v63, %s886_s2 }
 0x372   :  { %413 = vrot.lane.b32.xlu1 %v1025_v0, %s886_s2 }
 0x375   :  { %423 = vrot.lane.b32.xlu0 %v1023_v63, %s887_s30 }
 0x376   :  { %421 = vrot.lane.b32.xlu1 %v1025_v0, %s887_s30 }
 0x379   :  { %176 = vrot.lane.b32.xlu0 %v976_v7, %s889_s6 }
 0x37a   :  { %174 = vrot.lane.b32.xlu1 %v969_v4, %s889_s6 }
 0x37e   :  { %178 = vrot.lane.b32.xlu1 %v973_v6, %s889_s6 }
 0x3e3   :  { %v416_v1 = vpop.permute.xlu0 %415 }
 0x3e4   :  { %v414_v2 = vpop.permute.xlu1 %413  ;;  %v420_v3 = vadd.f32 %v1023_v63, %v416_v1 }
 0x3e5   :  { %v419_v5 = vadd.f32 %v1025_v0, %v414_v2 }
 0x3e7   :  { %v424_v8 = vpop.permute.xlu0 %423 }
 0x3e8   :  { %v428_v9 = vadd.f32 %v424_v8, %v420_v3  ;;  %v422_v10 = vpop.permute.xlu1 %421 }
 0x3e9   :  { %v427_v11 = vadd.f32 %v422_v10, %v419_v5 }
 0x3ea   :  { %778 = vrcp.f32 %v428_v9 }
 0x3eb   :  { %780 = vrcp.f32 %v427_v11  ;;  %v177_v12 = vpop.permute.xlu0 %176 }
 0x3ec   :  { %v184_v13 = vmul.f32 %v177_v12, %v985_v16  ;;  %v187_v7 = vmul.f32 %v177_v12, %v983_v14  ;;  %v175_v4 = vpop.permute.xlu1 %174 }
 0x3ed   :  { %v186_v6 = vmul.f32 %v175_v4, %v983_v14  ;;  %v183_v15 = vmul.f32 %v175_v4, %v985_v16 }
 0x3ef   :  { %v769_v17 = vpack.i.bf16 %v187_v7, %v186_v6  ;;  %v764_v18 = vpack.i.bf16 %v184_v13, %v183_v15 }
 0x3f0   :  { %v179_v21 = vpop.permute.xlu1 %178 }
 0x3f1   :  { %770 = vrot.lane.b32.xlu1 %v769_v17, %s890_s7  ;;  %765 = vrot.lane.b32.xlu0 %v764_v18, %s890_s7  ;;  %v188_v22 = vmul.f32 %v179_v21, %v983_v14  ;;  %v185_v23 = vmul.f32 %v179_v21, %v985_v16 }
 0x3f4   :  { %v779_v19 = vpop.eup %778 }
 0x3f5   :  { %v781_v20 = vpop.eup %780  ;;  %435 = vrot.lane.b32.xlu1 %v779_v19, %s879_s28 }
 0x3f6   :  { %433 = vrot.lane.b32.xlu0 %v781_v20, %s879_s28 }
 0x3f9   :  { %441 = vrot.lane.b32.xlu1 %v779_v19, %s888_s5 }
 0x3fa   :  { %439 = vrot.lane.b32.xlu0 %v781_v20, %s888_s5 }
 0x3fd   :  { %543 = vrot.lane.b32.xlu1 %v188_v22, %s890_s7 }
 0x3fe   :  { %458 = vrot.lane.b32.xlu0 %v185_v23, %s890_s7 }
 0x463   :  { %v766_v25 = vpop.permute.xlu0 %765  ;;  %v771_v26 = vpop.permute.xlu1 %770 }
 0x464   :  { %v768_v27 = vunpack.i.h.bf16 %v766_v25  ;;  %v767_v28 = vunpack.i.l.bf16 %v766_v25  ;;  %v773_v29 = vunpack.i.h.bf16 %v771_v26  ;;  %v772_v30 = vunpack.i.l.bf16 %v771_v26 }
 0x466   :  { %v733_v31 = vpack.c.bf16 %v768_v27, %v767_v28  ;;  %v736_v32 = vpack.c.bf16 %v773_v29, %v772_v30 }
 0x467   :  { %v436_v33 = vpop.permute.xlu1 %435 }
 0x468   :  { %v434_v34 = vpop.permute.xlu0 %433  ;;  %734 = vmatpush3.bf16.msra.mxu1 %v733_v31  ;;  %737 = vmatpush3.bf16.msra.mxu0 %v736_v32  ;;  %v446_v14 = vsel %vm399_vm3, %v779_v19, %v436_v33 }
 0x469   :  { %715 = vmatprep.subr.mxu0 %v885_v24  ;;  %706 = vmatprep.subr.mxu1 %v885_v24  ;;  %v445_v35 = vsel %vm399_vm3, %v781_v20, %v434_v34 }
 0x46b   :  { %v442_v16 = vpop.permute.xlu1 %441 }
 0x46c   :  { %v448_v36 = vsel %vm402_vm4, %v446_v14, %v442_v16  ;;  %v440_v37 = vpop.permute.xlu0 %439 }
 0x46d   :  { %v447_v38 = vsel %vm402_vm4, %v445_v35, %v440_v37  ;;  %v450_v39 = vmul.f32 %v1023_v63, %v448_v36 }
 0x46e   :  { %v449_v41 = vmul.f32 %v1025_v0, %v447_v38 }
 0x46f   :  { %v544_v40 = vpop.permute.xlu1 %543 }
 0x470   :  { %v459_v42 = vpop.permute.xlu0 %458  ;;  %716 = vmatpush3.msra.mxu0 %v544_v40 }
 0x471   :  { %707 = vmatpush3.msra.mxu1 %v459_v42  ;;  %718 = vmatmul.mubr.msk.f32.vlgmr.msra.gmra.mrb[4].mxu0 %vm74_vm0, %v450_v39 }
 0x472   :  { %709 = vmatmul.mubr.msk.f32.vlgmr.msra.gmra.mrb[2].mxu1 %vm74_vm0, %v449_v41 }
 0x544   :  { %v617_v24 = vpop.f32.mrb[4].mxu0 }
 0x545   :  { %622 = vst.msk [vmem:[#allocation8 + $0x8] sm:$0xff] %vm74_vm0, %v617_v24  ;;  %v532_v43 = vpop.f32.mrb[2].mxu1  ;;  %v719_v44 = vpop.f32.mrb[5].mxu0 }
 0x546   :  { %621 = vst.msk [vmem:[#allocation8] sm:$0xff] %vm74_vm0, %v532_v43  ;;  %v710_v45 = vpop.f32.mrb[3].mxu1 }
 0x547   :  { %859 = shalt.err (!%p856_p0)
}
 0x548   :  { %s860_s1 = scalar_lea.hbm %s1081_s4, 256 }
 0x549   :  { %p861_p1 = scmp.ne.s32.totalorder %s1081_s4, %s860_s1  ;;  %p864_p2 = scmp.lt.u32.totalorder %s860_s1, %s1081_s4 }
 0x54b   :  { %p866_p3 = pnand %p864_p2, %p861_p1 }
 0x54d   :  { %869 = shalt.err (!%p866_p3)
}
 0x54e   :  { %634 = dma.vmem_to_hbm [thread:$0]  %s629_s9, 256, %s1081_s4, [#allocation4], %s878_s27, %s878_s27, %s879_s28  }
 0x54f   :  { %874 = dma.done.wait [#allocation4], 256  }
 0x550   :  { %875 = vsyncadd [#allocation4], 4294967040 }
 0x551   :  { %638 = vsyncpa [#allocation3], 1 }
 0x552   :  { %639 = vsyncpa [#allocation6], 1 }
 0x553   :  { %640 = vsyncpa [#allocation4], 1 }

</bundles_post_ra>
